<compile_context>
chip_gen: v6e
topology: v6e:2x2x1
jax: 0.10.0
libtpu: 0.0.40
codegen_flags: <defaults>
</compile_context>

<pallas_src>
import jax
import jax.numpy as jnp
from jax.experimental import pallas as pl
from jax.experimental.pallas import tpu as pltpu

HEADS = 2
HEAD_DIM = 256            # GATConv(512, 256, heads=2, concat=True) -> 512 out
F_IN = HEADS * HEAD_DIM   # 512
ATT_SLOPE = 0.2           # PyG GATConv internal LeakyReLU default
LRELU_SLOPE = 0.01        # F.leaky_relu default
NEG_BIG = -1e30
VMEM_LIMIT = 32 * 1024 * 1024


def _leaky(v, slope):
    return jnp.where(v > 0.0, v, slope * v)


def _round_up(n, m):
    return ((n + m - 1) // m) * m


# ---------------------------------------------------------------------------
# Kernel 1: node-feature projection + per-node attention coefficients.
# ---------------------------------------------------------------------------
def proj_kernel(x_ref, wg_ref, attm_ref, xp_ref, coeff_ref):
    # x tile [TM, 512] bf16, wg [512, 512] bf16, attm [512, 2*HEADS] f32.
    xp = jnp.dot(x_ref[...], wg_ref[...], preferred_element_type=jnp.float32)
    # Block-diagonal attention matrix: one MXU matmul replaces 2*HEADS
    # broadcast-multiply + cross-lane (XLU) reductions.
    coeff_ref[...] = jnp.dot(xp, attm_ref[...],
                             preferred_element_type=jnp.float32)
    xp_ref[...] = xp.astype(xp_ref.dtype)     # keep projected features in bf16


# ---------------------------------------------------------------------------
# Kernel 2: attention softmax + aggregation + dense chain, per dst-row tile.
# ---------------------------------------------------------------------------
def attn_dense_kernel(bias_ref, adst_ref, asrcT_ref, xp_ref, bg_ref,
                      wa_ref, ba_ref, w1_ref, b1_ref, w2_ref, b2_ref,
                      w3_ref, b3_ref, y_ref):
    bias = bias_ref[...].astype(jnp.float32)        # [TM, Np] additive mask
    a_dst = adst_ref[...]                           # [TM, H]
    a_srcT = asrcT_ref[...]                         # [H, Np]
    xp = xp_ref[...]                                # [Np, 512] bf16

    head_outs = []
    for h in range(HEADS):
        e = a_dst[:, h:h + 1] + a_srcT[h:h + 1, :]  # e[dst, src], [TM, Np]
        e = _leaky(e, ATT_SLOPE)
        e = e + bias                                # non-edges -> ~-1e30
        m = jnp.max(e, axis=-1, keepdims=True)      # every row has a self-loop
        p = jnp.exp(e - m)                          # masked entries underflow to 0
        inv = pl.reciprocal(jnp.sum(p, axis=-1, keepdims=True), approx=True)
        attn = (p * inv).astype(jnp.bfloat16)
        xh = xp[:, h * HEAD_DIM:(h + 1) * HEAD_DIM]  # [Np, 256] bf16
        head_outs.append(jnp.dot(attn, xh, preferred_element_type=jnp.float32))

    g = jnp.concatenate(head_outs, axis=-1) + bg_ref[...]      # [TM, 512]
    g = _leaky(g, LRELU_SLOPE)
    # Dropout(p=0.3): identity at inference.  # TODO(synk): training-mode dropout not modeled

    y = jnp.dot(g.astype(jnp.bfloat16), wa_ref[...],
                preferred_element_type=jnp.float32) + ba_ref[...]           # 512->256
    y = _leaky(y, LRELU_SLOPE)
    y = _leaky(jnp.dot(y, w1_ref[...],
                       preferred_element_type=jnp.float32) + b1_ref[...],   # 256->128
               LRELU_SLOPE)
    y = _leaky(jnp.dot(y, w2_ref[...],
                       preferred_element_type=jnp.float32) + b2_ref[...],   # 128->64
               LRELU_SLOPE)
    y = jnp.dot(y, w3_ref[...],
                preferred_element_type=jnp.float32) + b3_ref[...]           # 64->3
    y_ref[...] = y


# ---------------------------------------------------------------------------
# Kernel 3: pairwise Euclidean distance (cdist, p=2) — VPU formulation (K=3).
# ---------------------------------------------------------------------------
def cdist_kernel(yt_ref, yT_ref, out_ref):
    yt = yt_ref[...]                                # [TM, K]
    yT = yT_ref[...]                                # [K, Np]
    d2 = None
    for k in range(yt.shape[1]):                    # K = 3, static
        diff = yt[:, k:k + 1] - yT[k:k + 1, :]      # [TM, Np]
        sq = diff * diff
        d2 = sq if d2 is None else d2 + sq
    out_ref[...] = jnp.sqrt(d2)


# ---------------------------------------------------------------------------
# Wrapper / glue.
# ---------------------------------------------------------------------------
def gat_forward(x, edge_index, params, tile_m=256):
    N, f_in = x.shape
    assert f_in == F_IN
    tm = min(tile_m, _round_up(N, 8))
    n_pad = _round_up(N, tm)
    grid = (n_pad // tm,)

    cp = pltpu.CompilerParams(dimension_semantics=("parallel",),
                              vmem_limit_bytes=VMEM_LIMIT)

    # -- glue: padding, dense adjacency additive bias, parameter packing --
    x_p = jnp.zeros((n_pad, f_in), jnp.bfloat16).at[:N].set(x.astype(jnp.bfloat16))

    adj = jnp.zeros((n_pad, n_pad), jnp.float32)
    adj = adj.at[edge_index[1], edge_index[0]].set(1.0)              # adj[dst, src]
    adj = adj.at[jnp.arange(n_pad), jnp.arange(n_pad)].set(1.0)      # add_self_loops
    adj_bias = jnp.where(adj > 0.0, 0.0, NEG_BIG).astype(jnp.bfloat16)
    # TODO(synk): duplicate edges in edge_index collapse to one entry here;
    # PyG GATConv would softmax over the duplicates on multigraphs.

    # Block-diagonal [512, 2*HEADS]: columns 0..H-1 -> a_src, H..2H-1 -> a_dst.
    attm = jnp.zeros((F_IN, 2 * HEADS), jnp.float32)
    for h in range(HEADS):
        sl = slice(h * HEAD_DIM, (h + 1) * HEAD_DIM)
        attm = attm.at[sl, h].set(params["att_src"][h])
        attm = attm.at[sl, HEADS + h].set(params["att_dst"][h])

    wg = params["wg"].astype(jnp.bfloat16)
    wa = params["wa"].astype(jnp.bfloat16)

    # -- kernel 1: projection + attention coefficients --
    xp, coeff = pl.pallas_call(
        proj_kernel,
        out_shape=(jax.ShapeDtypeStruct((n_pad, F_IN), jnp.bfloat16),
                   jax.ShapeDtypeStruct((n_pad, 2 * HEADS), jnp.float32)),
        grid=grid,
        in_specs=[pl.BlockSpec((tm, F_IN), lambda i: (i, 0)),
                  pl.BlockSpec((F_IN, F_IN), lambda i: (0, 0)),
                  pl.BlockSpec((F_IN, 2 * HEADS), lambda i: (0, 0))],
        out_specs=(pl.BlockSpec((tm, F_IN), lambda i: (i, 0)),
                   pl.BlockSpec((tm, 2 * HEADS), lambda i: (i, 0))),
        compiler_params=cp,
    )(x_p, wg, attm)

    a_dst = coeff[:, HEADS:]                     # [Np, H]
    a_srcT = jnp.transpose(coeff[:, :HEADS])     # [H, Np]; transpose done in glue

    # -- kernel 2: attention + dense chain --
    y = pl.pallas_call(
        attn_dense_kernel,
        out_shape=jax.ShapeDtypeStruct((n_pad, 3), jnp.float32),
        grid=grid,
        in_specs=[
            pl.BlockSpec((tm, n_pad), lambda i: (i, 0)),      # adj additive bias tile
            pl.BlockSpec((tm, HEADS), lambda i: (i, 0)),      # a_dst tile
            pl.BlockSpec((HEADS, n_pad), lambda i: (0, 0)),   # a_src^T (full)
            pl.BlockSpec((n_pad, F_IN), lambda i: (0, 0)),    # xp (full, bf16)
            pl.BlockSpec((1, F_IN), lambda i: (0, 0)),        # bg
            pl.BlockSpec((F_IN, 256), lambda i: (0, 0)),      # wa (bf16)
            pl.BlockSpec((1, 256), lambda i: (0, 0)),         # ba
            pl.BlockSpec((256, 128), lambda i: (0, 0)),       # w1
            pl.BlockSpec((1, 128), lambda i: (0, 0)),         # b1
            pl.BlockSpec((128, 64), lambda i: (0, 0)),        # w2
            pl.BlockSpec((1, 64), lambda i: (0, 0)),          # b2
            pl.BlockSpec((64, 3), lambda i: (0, 0)),          # w3
            pl.BlockSpec((1, 3), lambda i: (0, 0)),           # b3
        ],
        out_specs=pl.BlockSpec((tm, 3), lambda i: (i, 0)),
        compiler_params=cp,
    )(adj_bias, a_dst, a_srcT, xp, params["bg"],
      wa, params["ba"], params["w1"], params["b1"],
      params["w2"], params["b2"], params["w3"], params["b3"])

    # -- kernel 3: cdist --
    dist = pl.pallas_call(
        cdist_kernel,
        out_shape=jax.ShapeDtypeStruct((n_pad, n_pad), jnp.float32),
        grid=grid,
        in_specs=[pl.BlockSpec((tm, 3), lambda i: (i, 0)),
                  pl.BlockSpec((3, n_pad), lambda i: (0, 0))],
        out_specs=pl.BlockSpec((tm, n_pad), lambda i: (i, 0)),
        compiler_params=cp,
    )(y, jnp.transpose(y))

    return dist[:N, :N]


# ---------------------------------------------------------------------------
# Pure-JAX reference (mirrors the kernel's bf16 cast points so it is directly
# comparable; structure matches the PyTorch module at inference).
# ---------------------------------------------------------------------------
def gat_reference(x, edge_index, params):
    N = x.shape[0]
    wg = params["wg"].astype(jnp.bfloat16)
    xp = jnp.dot(x.astype(jnp.bfloat16), wg, preferred_element_type=jnp.float32)
    xp_b = xp.astype(jnp.bfloat16)

    adj = jnp.zeros((N, N), jnp.float32)
    adj = adj.at[edge_index[1], edge_index[0]].set(1.0)
    adj = adj.at[jnp.arange(N), jnp.arange(N)].set(1.0)

    head_outs = []
    for h in range(HEADS):
        xh = xp[:, h * HEAD_DIM:(h + 1) * HEAD_DIM]
        a_src = xh @ params["att_src"][h]            # [N]
        a_dst = xh @ params["att_dst"][h]            # [N]
        e = a_dst[:, None] + a_src[None, :]          # e[dst, src]
        e = _leaky(e, ATT_SLOPE)
        e = jnp.where(adj > 0.0, e, NEG_BIG)
        m = jnp.max(e, axis=-1, keepdims=True)
        p = jnp.exp(e - m)
        attn = p / jnp.sum(p, axis=-1, keepdims=True)
        head_outs.append(
            jnp.dot(attn.astype(jnp.bfloat16),
                    xp_b[:, h * HEAD_DIM:(h + 1) * HEAD_DIM],
                    preferred_element_type=jnp.float32))
    g = jnp.concatenate(head_outs, axis=-1) + params["bg"]
    g = _leaky(g, LRELU_SLOPE)

    y = jnp.dot(g.astype(jnp.bfloat16), params["wa"].astype(jnp.bfloat16),
                preferred_element_type=jnp.float32) + params["ba"]
    y = _leaky(y, LRELU_SLOPE)
    y = _leaky(jnp.dot(y, params["w1"],
                       preferred_element_type=jnp.float32) + params["b1"], LRELU_SLOPE)
    y = _leaky(jnp.dot(y, params["w2"],
                       preferred_element_type=jnp.float32) + params["b2"], LRELU_SLOPE)
    y = jnp.dot(y, params["w3"],
                preferred_element_type=jnp.float32) + params["b3"]
    diff = y[:, None, :] - y[None, :, :]
    return jnp.sqrt(jnp.sum(diff * diff, axis=-1))


# ---------------------------------------------------------------------------
# Parameter init (matches module shapes; weights stored [in, out]).
# ---------------------------------------------------------------------------
def _glorot(key, shape):
    fan_in, fan_out = shape
    lim = (6.0 / (fan_in + fan_out)) ** 0.5
    return jax.random.uniform(key, shape, jnp.float32, -lim, lim)


def init_params(key):
    ks = jax.random.split(key, 12)
    return {
        # GATConv(512, 256, heads=2): lin [512, heads*256] (no bias), att, out bias
        "wg": _glorot(ks[0], (F_IN, HEADS * HEAD_DIM)),
        "att_src": _glorot(ks[1], (HEADS, HEAD_DIM)),
        "att_dst": _glorot(ks[2], (HEADS, HEAD_DIM)),
        "bg": jnp.zeros((1, HEADS * HEAD_DIM), jnp.float32),
        # dense chain 512 -> 256 -> 128 -> 64 -> 3
        "wa": _glorot(ks[3], (512, 256)),
        "ba": 0.01 * jax.random.normal(ks[4], (1, 256), jnp.float32),
        "w1": _glorot(ks[5], (256, 128)),
        "b1": 0.01 * jax.random.normal(ks[6], (1, 128), jnp.float32),
        "w2": _glorot(ks[7], (128, 64)),
        "b2": 0.01 * jax.random.normal(ks[8], (1, 64), jnp.float32),
        "w3": _glorot(ks[9], (64, 3)),
        "b3": 0.01 * jax.random.normal(ks[10], (1, 3), jnp.float32),
    }


if __name__ == "__main__":
    key = jax.random.PRNGKey(0)
    k_x, k_src, k_dst, k_p = jax.random.split(key, 4)

    N, E = 32, 64
    x = jax.random.normal(k_x, (N, F_IN), jnp.float32)
    src = jax.random.randint(k_src, (E,), 0, N)
    dst = jax.random.randint(k_dst, (E,), 0, N)
    edge_index = jnp.stack([src, dst], axis=0)      # [2, E], PyG convention

    params = init_params(k_p)

    # tile_m=16 -> grid of 2 row-tiles, exercising the multi-tile pipeline path.
    dist = gat_forward(x, edge_index, params, tile_m=16)
    dist = jax.block_until_ready(dist)

    ref = jax.block_until_ready(gat_reference(x, edge_index, params))

    assert dist.shape == (N, N)
    assert bool(jnp.all(jnp.isfinite(dist)))
    assert bool(jnp.allclose(dist, ref, rtol=3e-2, atol=3e-2)), (
        float(jnp.max(jnp.abs(dist - ref))))
    print("KERNEL_OK")
</pallas_src>

<mosaic_0001>
module attributes {stable_mosaic.version = 11 : i64} {
  func.func @proj_kernel(%arg0: i32, %arg1: memref<16x512xbf16, #tpu.memory_space<vmem>>, %arg2: memref<512x512xbf16, #tpu.memory_space<vmem>>, %arg3: memref<512x4xf32, #tpu.memory_space<vmem>>, %arg4: memref<16x512xbf16, #tpu.memory_space<vmem>>, %arg5: memref<16x4xf32, #tpu.memory_space<vmem>>) attributes {dimension_semantics = [#tpu.dimension_semantics<parallel>], iteration_bounds = array<i64: 2>, scalar_prefetch = 0 : i64, scratch_operands = 0 : i64, tpu.core_type = #tpu.core_type<tc>, window_params = [{transform_indices = @transform_0, window_bounds = array<i64: 16, 512>}, {pipeline_mode = #tpu.pipeline_mode<synchronous>, transform_indices = @transform_1, window_bounds = array<i64: 512, 512>}, {pipeline_mode = #tpu.pipeline_mode<synchronous>, transform_indices = @transform_2, window_bounds = array<i64: 512, 4>}, {transform_indices = @transform_3, window_bounds = array<i64: 16, 512>}, {transform_indices = @transform_4, window_bounds = array<i64: 16, 4>}]} {
    %c0 = arith.constant 0 : index
    %c0_0 = arith.constant 0 : index
    %0 = vector.load %arg1[%c0, %c0_0] : memref<16x512xbf16, #tpu.memory_space<vmem>>, vector<16x512xbf16>
    %c0_1 = arith.constant 0 : index
    %c0_2 = arith.constant 0 : index
    %1 = vector.load %arg2[%c0_1, %c0_2] : memref<512x512xbf16, #tpu.memory_space<vmem>>, vector<512x512xbf16>
    %cst = arith.constant dense<0.000000e+00> : vector<16x512xf32>
    %2 = tpu.matmul %0, %1, %cst {dimension_numbers = #tpu.dot_dimension_numbers<[1], [0], [0], [1], [0, 0, 1, 1], [], []>} : vector<16x512xbf16>, vector<512x512xbf16>, vector<16x512xf32> -> vector<16x512xf32>
    %c0_3 = arith.constant 0 : index
    %c0_4 = arith.constant 0 : index
    %3 = vector.load %arg3[%c0_3, %c0_4] : memref<512x4xf32, #tpu.memory_space<vmem>>, vector<512x4xf32>
    %cst_5 = arith.constant dense<0.000000e+00> : vector<16x4xf32>
    %4 = tpu.matmul %2, %3, %cst_5 {dimension_numbers = #tpu.dot_dimension_numbers<[1], [0], [0], [1], [0, 0, 1, 1], [], []>} : vector<16x512xf32>, vector<512x4xf32>, vector<16x4xf32> -> vector<16x4xf32>
    %c0_6 = arith.constant 0 : index
    %c0_7 = arith.constant 0 : index
    %5 = vector.load %arg5[%c0_6, %c0_7] : memref<16x4xf32, #tpu.memory_space<vmem>>, vector<16x4xf32>
    tpu.vector_store %arg5[%c0_6, %c0_7], %4 {strides = array<i32>} : memref<16x4xf32, #tpu.memory_space<vmem>>, vector<16x4xf32>,
    %6 = arith.truncf %2 : vector<16x512xf32> to vector<16x512xbf16>
    %c0_8 = arith.constant 0 : index
    %c0_9 = arith.constant 0 : index
    %7 = vector.load %arg4[%c0_8, %c0_9] : memref<16x512xbf16, #tpu.memory_space<vmem>>, vector<16x512xbf16>
    tpu.vector_store %arg4[%c0_8, %c0_9], %6 {strides = array<i32>} : memref<16x512xbf16, #tpu.memory_space<vmem>>, vector<16x512xbf16>,
    return
  }
  func.func @transform_0(%arg0: i32) -> (i32, i32) {
    %c0_i32 = arith.constant 0 : i32
    %c0_i32_0 = arith.constant 0 : i32
    return %arg0, %c0_i32 : i32, i32
  }
  func.func @transform_1(%arg0: i32) -> (i32, i32) {
    %c0_i32 = arith.constant 0 : i32
    %c0_i32_0 = arith.constant 0 : i32
    %c0_i32_1 = arith.constant 0 : i32
    return %c0_i32, %c0_i32_0 : i32, i32
  }
  func.func @transform_2(%arg0: i32) -> (i32, i32) {
    %c0_i32 = arith.constant 0 : i32
    %c0_i32_0 = arith.constant 0 : i32
    %c0_i32_1 = arith.constant 0 : i32
    return %c0_i32, %c0_i32_0 : i32, i32
  }
  func.func @transform_3(%arg0: i32) -> (i32, i32) {
    %c0_i32 = arith.constant 0 : i32
    %c0_i32_0 = arith.constant 0 : i32
    return %arg0, %c0_i32 : i32, i32
  }
  func.func @transform_4(%arg0: i32) -> (i32, i32) {
    %c0_i32 = arith.constant 0 : i32
    %c0_i32_0 = arith.constant 0 : i32
    return %arg0, %c0_i32 : i32, i32
  }
}

</mosaic_0001>

<bundles_post_ra>
// kernel: tpu_custom_call.1
= control target key start
LH: loop header
LB: loop body
LE: loop exit
PB: predicated region body
PF: predicated region fallthrough
CT: control target
= control target key end

     0   :  { %10 = vsyncpa [#allocation3], 0  ;;  %s2518_s0 = inlined_call_operand.vmem [shape: bf16[32,512], index: 0, kind: input, shape index: {}]   ;;  %s2519_s1 = inlined_call_operand.hbm [shape: bf16[512,512], index: 1, kind: input, shape index: {}]   ;;  %s2520_s2 = inlined_call_operand.vmem [shape: f32[512,4], index: 2, kind: input, shape index: {}]   ;;  %s2521_s3 = inlined_call_operand.hbm [shape: bf16[32,512], index: 3, kind: output, shape index: {0}]   ;;  %s2522_s4 = inlined_call_operand.vmem [shape: f32[32,4], index: 4, kind: output, shape index: {1}]  }
   0x1   :  { %11 = vsyncpa [#allocation4], 0 }
   0x2   :  { %13 = vsyncpa [#allocation4 + $0x1], 0  ;;  %s2175_s15 = smov 0   ;;  %s2177_s16 = smov 0  }
   0x3   :  { %s2179_s17 = smov 0   ;;  %s2181_s18 = smov 0  }
   0x4 LB: > { %s2196_s19 = sadd.s32 4294967295, %s2142_s18   ;;  %s1563_s20 = sadd.s32 4294967294, %s2142_s18   ;;  %s2142_s18 = sphi %s2181_s18, %s2530_s18   ;;  %s2138_s17 = sphi %s2179_s17, %s2529_s17   ;;  %s2134_s16 = sphi %s2177_s16, %s2528_s16   ;;  %s2130_s15 = sphi %s2175_s15, %s2527_s15  }
   0x5   : > { %s2200_s21 = sadd.s32 1, %s2142_s18   ;;  %s94_s22 = sadd.s32 1, %s2138_s17 }
   0x6   : > { %s91_s23 = ssub.s32 %s2142_s18, %s2200_s21  ;;  %p104_p0 = scmp.ne.s32.totalorder %s2138_s17, %s2134_s16 }
   0x7   : > { %p92_p1 = scmp.eq.s32.totalorder %s91_s23, 0  ;;  %p105_p2 = scmp.eq.s32.totalorder %s2196_s19, 1 }
   0x8   : > { %p110_p3 = scmp.ne.s32.totalorder %s2134_s16, %s2130_s15  ;;  %p111_p4 = scmp.eq.s32.totalorder %s1563_s20, 1 }
   0x9   : > { %s2211_s24 = scalar_select %p92_p1, %s2138_s17, %s94_s22  }
   0xa   : > { %p2213_p5 = por %p105_p2, %p104_p0  ;;  %p2217_p6 = por %p111_p4, %p110_p3 }
   0xb   : > { %p1564_p7 = scmp.ge.s32.totalorder %s2142_s18, 1  ;;  %p144_p8 = scmp.lt.s32.totalorder %s2142_s18, 3 }
   0xc   : > { %s2524_s26 = scalar_select %p2217_p6, 1, 0 }
   0xd   : > { %p1814_p9 = scmp.eq.s32.totalorder %s2196_s19, 0  ;;  %p2224_p10 = pnand %p1564_p7, %p144_p8 }
   0xe   : > { %s2144_s28 = smov [#allocation2]  }
   0xf   : > { %s156_s29 = sshll.u32 %s2144_s28, 4  ;;  %p1806_p11 = pneg %p2224_p10  ;;  %s157_s29 = int_to_ptr.vmem [resolvable:$true] %s156_s29 }
  0x10   : > { %s2063_s30 = scalar_lea.vmem %s157_s29, 16384  ;;  %p2071_p3 = scmp.lt.s32.totalorder %s157_s29, %s157_s29 }
  0x11   : > { %p1807_p12 = pnand %p1814_p9, %p1806_p11  ;;  %p2064_p0 = scmp.ne.s32.totalorder %s157_s29, %s2063_s30 }
  0x12   : > { %p2072_p4 = scmp.lt.s32.totalorder %s2063_s30, %s2063_s30 }
  0x13   : > { %p2054_p13 = pneg %p1807_p12 }
  0x14   : > { %p2073_p6 = por %p2072_p4, %p2071_p3 }
  0x15   : > { %p2066_p1 = pnand %p2064_p0, %p2054_p13 }
  0x17   : > { %p2067_p2 = pneg %p2066_p1 }
  0x19   : > { %p2074_p7 = pnand %p2073_p6, %p2067_p2 }
  0x1b   : > { %2077 = shalt.err (!%p2074_p7)
}
  0x1c   : > { %s2145_s5 = smov 256   ;;  %s2146_s6 = smov 16  }
  0x1d   : > { %1809 = dma.hbm_to_vmem [thread:$0]  (!%p1807_p12), %s2519_s1, 16384, %s157_s29, [#allocation3], %s2145_s5, %s2145_s5, %s2146_s6  }
  0x1e   : > { %185 = sbr.rel (%p2224_p10) target bundleno = 568 (0x238), region = 32 }
  0x23   : > { %2121 = dma.done.wait (%p1814_p9), [#allocation3], 16384  }
  0x24   : > { %2123 = vsyncadd (%p1814_p9), [#allocation3], 4294950912  ;;  %v1854_v0 = vld [vmem:[#allocation2 + $0xe4] ss:$16 sps:$4 sm:$0xff]   ;;  %v1858_v2 = vld [vmem:[#allocation2 + $0xe0] ss:$16 sps:$4 sm:$0xff]  }
  0x25   : > { %v1856_v1 = vld [vmem:[#allocation2 + $0x2e4] ss:$16 sps:$4 sm:$0xff]   ;;  %1023 = vmatprep.subr.bf16.mxu0 %v1854_v0  ;;  %v1859_v3 = vld [vmem:[#allocation2 + $0x2e0] ss:$16 sps:$4 sm:$0xff]   ;;  %s1570_s9 = sshll.u32 %s2196_s19, 1  ;;  %s207_s14 = sand.u32 1, %s2134_s16  }
  0x26   : > { %1066 = vmatprep.subr.bf16.mxu1 %v1856_v1  ;;  %v1860_v4 = vld [vmem:[#allocation2 + $0xc4] ss:$16 sps:$4 sm:$0xff]   ;;  %1024 = vmatpush1.bf16.msra.mxu0 %v1858_v2  ;;  %v1864_v6 = vld [vmem:[#allocation2 + $0xc0] ss:$16 sps:$4 sm:$0xff]   ;;  %p218_p6 = scmp.lt.s32.totalorder %s1570_s9, 3  ;;  %s1569_s20 = sshll.u32 %s207_s14, 5 }
  0x27   : > { %1067 = vmatpush1.bf16.msra.mxu1 %v1859_v3  ;;  %v1862_v5 = vld [vmem:[#allocation2 + $0x2c4] ss:$16 sps:$4 sm:$0xff]   ;;  %1025 = vmatprep.subr.bf16.mxu0 %v1860_v4  ;;  %v1865_v7 = vld [vmem:[#allocation2 + $0x2c0] ss:$16 sps:$4 sm:$0xff]   ;;  %v1958_v2 = vld [vmem:[#allocation2 + $0xec] ss:$16 sps:$4 sm:$0xff]  }
  0x28   : > { %1068 = vmatprep.subr.bf16.mxu1 %v1862_v5  ;;  %v1866_v8 = vld [vmem:[#allocation2 + $0xa4] ss:$16 sps:$4 sm:$0xff]   ;;  %v1870_v10 = vld [vmem:[#allocation2 + $0xa0] ss:$16 sps:$4 sm:$0xff]   ;;  %s2532_s9 = smov (!%p218_p6, %s1570_s9), 3  ;;  %s2457_s22 = scalar_lea.vmem [#allocation5], %s1569_s20 }
  0x29   : > { %v1868_v9 = vld [vmem:[#allocation2 + $0x2a4] ss:$16 sps:$4 sm:$0xff]   ;;  %v1871_v11 = vld [vmem:[#allocation2 + $0x2a0] ss:$16 sps:$4 sm:$0xff]   ;;  %s1717_s10 = sshll.u32 %s2532_s9, 4  ;;  %s1460_s23 = sshll.u32 %s2457_s22, 4  ;;  %s2464_s23 = int_to_ptr.vmem [resolvable:$true] %s1460_s23 }
  0x2a   : > { %1026 = vmatpush1.bf16.msra.mxu0 %v1864_v6  ;;  %v1872_v12 = vld [vmem:[#allocation2 + $0x84] ss:$16 sps:$4 sm:$0xff]   ;;  %v1876_v14 = vld [vmem:[#allocation2 + $0x80] ss:$16 sps:$4 sm:$0xff]   ;;  %s2248_s13 = scalar_lea.vmem %s2518_s0, %s1717_s10  ;;  %v1961_v3 = vld [vmem:[#allocation2 + $0x2ec] ss:$16 sps:$4 sm:$0xff]  }
  0x2b   : > { %1069 = vmatpush1.bf16.msra.mxu1 %v1865_v7  ;;  %1027 = vmatprep.subr.bf16.mxu0 %v1866_v8  ;;  %v1874_v13 = vld [vmem:[#allocation2 + $0x284] ss:$16 sps:$4 sm:$0xff]   ;;  %v1877_v15 = vld [vmem:[#allocation2 + $0x280] ss:$16 sps:$4 sm:$0xff]   ;;  %v1955_v51 = vld [vmem:[%s2248_s13 + $0xc] ss:$16 sps:$4 sm:$0xff]  }
  0x2c   : > { %1070 = vmatprep.subr.bf16.mxu1 %v1868_v9  ;;  %v1878_v16 = vld [vmem:[#allocation2 + $0x64] ss:$16 sps:$4 sm:$0xff]   ;;  %v1882_v18 = vld [vmem:[#allocation2 + $0x60] ss:$16 sps:$4 sm:$0xff]   ;;  %1098 = vmatprep.mubr.bf16.mxu1 %v1955_v51  ;;  %v2256_v5 = vld [vmem:[%s2248_s13 + $0x8] ss:$16 sps:$4 sm:$0xff]  }
  0x2d   : > { %v1880_v17 = vld [vmem:[#allocation2 + $0x264] ss:$16 sps:$4 sm:$0xff]   ;;  %v1883_v19 = vld [vmem:[#allocation2 + $0x260] ss:$16 sps:$4 sm:$0xff]   ;;  %v1956_v6 = vld [vmem:[#allocation2 + $0xe8] ss:$16 sps:$4 sm:$0xff]  }
  0x2e   : > { %1028 = vmatpush1.bf16.msra.mxu0 %v1870_v10  ;;  %v1884_v20 = vld [vmem:[#allocation2 + $0x44] ss:$16 sps:$4 sm:$0xff]   ;;  %v1888_v22 = vld [vmem:[#allocation2 + $0x40] ss:$16 sps:$4 sm:$0xff]   ;;  %v1959_v7 = vld [vmem:[#allocation2 + $0x2e8] ss:$16 sps:$4 sm:$0xff]  }
  0x2f   : > { %1071 = vmatpush1.bf16.msra.mxu1 %v1871_v11  ;;  %1029 = vmatprep.subr.bf16.mxu0 %v1872_v12  ;;  %v1886_v21 = vld [vmem:[#allocation2 + $0x244] ss:$16 sps:$4 sm:$0xff]   ;;  %v1889_v23 = vld [vmem:[#allocation2 + $0x240] ss:$16 sps:$4 sm:$0xff]   ;;  %v1964_v8 = vld [vmem:[#allocation2 + $0xcc] ss:$16 sps:$4 sm:$0xff]  }
  0x30   : > { %1072 = vmatprep.subr.bf16.mxu1 %v1874_v13  ;;  %v1890_v24 = vld [vmem:[#allocation2 + $0x24] ss:$16 sps:$4 sm:$0xff]   ;;  %v1894_v26 = vld [vmem:[#allocation2 + $0x20] ss:$16 sps:$4 sm:$0xff]   ;;  %v1967_v9 = vld [vmem:[#allocation2 + $0x2cc] ss:$16 sps:$4 sm:$0xff]  }
  0x31   : > { %v1892_v25 = vld [vmem:[#allocation2 + $0x224] ss:$16 sps:$4 sm:$0xff]   ;;  %v1895_v27 = vld [vmem:[#allocation2 + $0x220] ss:$16 sps:$4 sm:$0xff]   ;;  %v1962_v10 = vld [vmem:[#allocation2 + $0xc8] ss:$16 sps:$4 sm:$0xff]  }
  0x32   : > { %1030 = vmatpush1.bf16.msra.mxu0 %v1876_v14  ;;  %v1896_v28 = vld [vmem:[#allocation2 + $0x4] ss:$16 sps:$4 sm:$0xff]   ;;  %v1900_v30 = vld [vmem:[#allocation2] ss:$16 sps:$4 sm:$0xff]   ;;  %v1965_v11 = vld [vmem:[#allocation2 + $0x2c8] ss:$16 sps:$4 sm:$0xff]  }
  0x33   : > { %1073 = vmatpush1.bf16.msra.mxu1 %v1877_v15  ;;  %1031 = vmatprep.subr.bf16.mxu0 %v1878_v16  ;;  %v1898_v29 = vld [vmem:[#allocation2 + $0x204] ss:$16 sps:$4 sm:$0xff]   ;;  %v1901_v31 = vld [vmem:[#allocation2 + $0x200] ss:$16 sps:$4 sm:$0xff]   ;;  %v1970_v12 = vld [vmem:[#allocation2 + $0xac] ss:$16 sps:$4 sm:$0xff]  }
  0x34   : > { %1074 = vmatprep.subr.bf16.mxu1 %v1880_v17  ;;  %v1902_v32 = vld [vmem:[#allocation2 + $0x1e4] ss:$16 sps:$4 sm:$0xff]   ;;  %v1906_v34 = vld [vmem:[#allocation2 + $0x1e0] ss:$16 sps:$4 sm:$0xff]   ;;  %v1973_v13 = vld [vmem:[#allocation2 + $0x2ac] ss:$16 sps:$4 sm:$0xff]  }
  0x35   : > { %v1904_v33 = vld [vmem:[#allocation2 + $0x3e4] ss:$16 sps:$4 sm:$0xff]   ;;  %v1907_v35 = vld [vmem:[#allocation2 + $0x3e0] ss:$16 sps:$4 sm:$0xff]   ;;  %v1968_v14 = vld [vmem:[#allocation2 + $0xa8] ss:$16 sps:$4 sm:$0xff]  }
  0x36   : > { %1032 = vmatpush1.bf16.msra.mxu0 %v1882_v18  ;;  %v1908_v36 = vld [vmem:[#allocation2 + $0x1c4] ss:$16 sps:$4 sm:$0xff]   ;;  %v1912_v38 = vld [vmem:[#allocation2 + $0x1c0] ss:$16 sps:$4 sm:$0xff]   ;;  %v1971_v15 = vld [vmem:[#allocation2 + $0x2a8] ss:$16 sps:$4 sm:$0xff]  }
  0x37   : > { %1075 = vmatpush1.bf16.msra.mxu1 %v1883_v19  ;;  %1033 = vmatprep.subr.bf16.mxu0 %v1884_v20  ;;  %v1910_v37 = vld [vmem:[#allocation2 + $0x3c4] ss:$16 sps:$4 sm:$0xff]   ;;  %v1913_v39 = vld [vmem:[#allocation2 + $0x3c0] ss:$16 sps:$4 sm:$0xff]   ;;  %v1976_v16 = vld [vmem:[#allocation2 + $0x8c] ss:$16 sps:$4 sm:$0xff]  }
  0x38   : > { %1076 = vmatprep.subr.bf16.mxu1 %v1886_v21  ;;  %v1914_v40 = vld [vmem:[#allocation2 + $0x1a4] ss:$16 sps:$4 sm:$0xff]   ;;  %v1918_v42 = vld [vmem:[#allocation2 + $0x1a0] ss:$16 sps:$4 sm:$0xff]   ;;  %v1979_v17 = vld [vmem:[#allocation2 + $0x28c] ss:$16 sps:$4 sm:$0xff]  }
  0x39   : > { %v1916_v41 = vld [vmem:[#allocation2 + $0x3a4] ss:$16 sps:$4 sm:$0xff]   ;;  %v1919_v43 = vld [vmem:[#allocation2 + $0x3a0] ss:$16 sps:$4 sm:$0xff]   ;;  %v1974_v18 = vld [vmem:[#allocation2 + $0x88] ss:$16 sps:$4 sm:$0xff]  }
  0x3a   : > { %1034 = vmatpush1.bf16.msra.mxu0 %v1888_v22  ;;  %v1920_v44 = vld [vmem:[#allocation2 + $0x184] ss:$16 sps:$4 sm:$0xff]   ;;  %v1924_v46 = vld [vmem:[#allocation2 + $0x180] ss:$16 sps:$4 sm:$0xff]   ;;  %v1977_v19 = vld [vmem:[#allocation2 + $0x288] ss:$16 sps:$4 sm:$0xff]  }
  0x3b   : > { %1077 = vmatpush1.bf16.msra.mxu1 %v1889_v23  ;;  %1035 = vmatprep.subr.bf16.mxu0 %v1890_v24  ;;  %v1922_v45 = vld [vmem:[#allocation2 + $0x384] ss:$16 sps:$4 sm:$0xff]   ;;  %v1925_v47 = vld [vmem:[#allocation2 + $0x380] ss:$16 sps:$4 sm:$0xff]   ;;  %v1982_v20 = vld [vmem:[#allocation2 + $0x6c] ss:$16 sps:$4 sm:$0xff]  }
  0x3c   : > { %1078 = vmatprep.subr.bf16.mxu1 %v1892_v25  ;;  %v1926_v48 = vld [vmem:[#allocation2 + $0x164] ss:$16 sps:$4 sm:$0xff]   ;;  %v1930_v52 = vld [vmem:[#allocation2 + $0x160] ss:$16 sps:$4 sm:$0xff]   ;;  %v1985_v21 = vld [vmem:[#allocation2 + $0x26c] ss:$16 sps:$4 sm:$0xff]  }
  0x3d   : > { %v1952_v49 = vld [vmem:[%s2248_s13 + $0x4] ss:$16 sps:$4 sm:$0xff]   ;;  %v1931_v53 = vld [vmem:[#allocation2 + $0x360] ss:$16 sps:$4 sm:$0xff]   ;;  %v1980_v22 = vld [vmem:[#allocation2 + $0x68] ss:$16 sps:$4 sm:$0xff]  }
  0x3e   : > { %1036 = vmatpush1.bf16.msra.mxu0 %v1894_v26  ;;  %v1928_v50 = vld [vmem:[#allocation2 + $0x364] ss:$16 sps:$4 sm:$0xff]   ;;  %1055 = vmatprep.mubr.bf16.mxu0 %v1952_v49  ;;  %v1936_v56 = vld [vmem:[#allocation2 + $0x140] ss:$16 sps:$4 sm:$0xff]   ;;  %v1983_v23 = vld [vmem:[#allocation2 + $0x268] ss:$16 sps:$4 sm:$0xff]  }
  0x3f   : > { %1079 = vmatpush1.bf16.msra.mxu1 %v1895_v27  ;;  %1037 = vmatprep.subr.bf16.mxu0 %v1896_v28  ;;  %v1932_v54 = vld [vmem:[#allocation2 + $0x144] ss:$16 sps:$4 sm:$0xff]   ;;  %v1937_v57 = vld [vmem:[#allocation2 + $0x340] ss:$16 sps:$4 sm:$0xff]   ;;  %v1988_v24 = vld [vmem:[#allocation2 + $0x4c] ss:$16 sps:$4 sm:$0xff]  }
  0x40   : > { %1080 = vmatprep.subr.bf16.mxu1 %v1898_v29  ;;  %v1934_v55 = vld [vmem:[#allocation2 + $0x344] ss:$16 sps:$4 sm:$0xff]   ;;  %v1942_v60 = vld [vmem:[#allocation2 + $0x120] ss:$16 sps:$4 sm:$0xff]   ;;  %v1991_v25 = vld [vmem:[#allocation2 + $0x24c] ss:$16 sps:$4 sm:$0xff]  }
  0x41   : > { %v1938_v58 = vld [vmem:[#allocation2 + $0x124] ss:$16 sps:$4 sm:$0xff]   ;;  %v1943_v61 = vld [vmem:[#allocation2 + $0x320] ss:$16 sps:$4 sm:$0xff]   ;;  %v1986_v26 = vld [vmem:[#allocation2 + $0x48] ss:$16 sps:$4 sm:$0xff]  }
  0x42   : > { %1038 = vmatpush1.bf16.msra.mxu0 %v1900_v30  ;;  %v1940_v59 = vld [vmem:[#allocation2 + $0x324] ss:$16 sps:$4 sm:$0xff]   ;;  %v1948_v0 = vld [vmem:[#allocation2 + $0x100] ss:$16 sps:$4 sm:$0xff]   ;;  %v1989_v27 = vld [vmem:[#allocation2 + $0x248] ss:$16 sps:$4 sm:$0xff]  }
  0x43   : > { %1081 = vmatpush1.bf16.msra.mxu1 %v1901_v31  ;;  %1039 = vmatprep.subr.bf16.mxu0 %v1902_v32  ;;  %v1944_v62 = vld [vmem:[#allocation2 + $0x104] ss:$16 sps:$4 sm:$0xff]   ;;  %v1949_v1 = vld [vmem:[#allocation2 + $0x300] ss:$16 sps:$4 sm:$0xff]   ;;  %v1994_v28 = vld [vmem:[#allocation2 + $0x2c] ss:$16 sps:$4 sm:$0xff]  }
  0x44   : > { %1082 = vmatprep.subr.bf16.mxu1 %v1904_v33  ;;  %v1946_v63 = vld [vmem:[#allocation2 + $0x304] ss:$16 sps:$4 sm:$0xff]   ;;  %v2253_v4 = vld [vmem:[%s2248_s13] ss:$16 sps:$4 sm:$0xff]   ;;  %v1997_v29 = vld [vmem:[#allocation2 + $0x22c] ss:$16 sps:$4 sm:$0xff]  }
  0x45   : > { %v1992_v30 = vld [vmem:[#allocation2 + $0x28] ss:$16 sps:$4 sm:$0xff]   ;;  %v2000_v32 = vld [vmem:[#allocation2 + $0xc] ss:$16 sps:$4 sm:$0xff]   ;;  %s1723_s27 = sshll.u32 %s2196_s19, 9  ;;  %s2474_s5 = scalar_lea.sflag [#allocation4], %s207_s14 }
  0x46   : > { %1040 = vmatpush2.bf16.msra.mxu0 %v1906_v34  ;;  %v1995_v31 = vld [vmem:[#allocation2 + $0x228] ss:$16 sps:$4 sm:$0xff]   ;;  %v2003_v33 = vld [vmem:[#allocation2 + $0x20c] ss:$16 sps:$4 sm:$0xff]   ;;  %s2470_s30 = scalar_lea.hbm %s2521_s3, %s1723_s27  ;;  %s2078_s6 = scalar_lea.vmem %s2464_s23, 512 }
  0x47   : > { %1083 = vmatpush2.bf16.msra.mxu1 %v1907_v35  ;;  %1041 = vmatprep.subr.bf16.mxu0 %v1908_v36  ;;  %v1998_v34 = vld [vmem:[#allocation2 + $0x8] ss:$16 sps:$4 sm:$0xff]   ;;  %v2006_v36 = vld [vmem:[#allocation2 + $0x1ec] ss:$16 sps:$4 sm:$0xff]   ;;  %p2079_p8 = scmp.ne.s32.totalorder %s2464_s23, %s2078_s6  ;;  %s2147_s7 = smov [#allocation5]  }
  0x48   : > { %1084 = vmatprep.subr.bf16.mxu1 %v1910_v37  ;;  %v2001_v35 = vld [vmem:[#allocation2 + $0x208] ss:$16 sps:$4 sm:$0xff]   ;;  %v2009_v37 = vld [vmem:[#allocation2 + $0x3ec] ss:$16 sps:$4 sm:$0xff]   ;;  %s2082_s8 = sshll.u32 %s2147_s7, 4  ;;  %s2083_s8 = int_to_ptr.vmem [resolvable:$false] %s2082_s8 }
  0x49   : > { %p2080_p9 = pnand %p2079_p8, %p2213_p5  ;;  %s2084_s10 = scalar_lea.vmem %s2083_s8, 1024 }
  0x4a   : > { %1042 = vmatpush2.bf16.msra.mxu0 %v1912_v38  ;;  %v2004_v38 = vld [vmem:[#allocation2 + $0x1e8] ss:$16 sps:$4 sm:$0xff]   ;;  %p2085_p11 = scmp.lt.s32.totalorder %s2464_s23, %s2083_s8  ;;  %p2086_p12 = scmp.lt.s32.totalorder %s2084_s10, %s2078_s6 }
  0x4b   : > { %1085 = vmatpush2.bf16.msra.mxu1 %v1913_v39  ;;  %1043 = vmatprep.subr.bf16.mxu0 %v1914_v40  ;;  %v2007_v39 = vld [vmem:[#allocation2 + $0x3e8] ss:$16 sps:$4 sm:$0xff]   ;;  %v2012_v40 = vld [vmem:[#allocation2 + $0x1cc] ss:$16 sps:$4 sm:$0xff]   ;;  %p2081_p10 = pneg %p2080_p9 }
  0x4c   : > { %1086 = vmatprep.subr.bf16.mxu1 %v1916_v41  ;;  %v2015_v41 = vld [vmem:[#allocation2 + $0x3cc] ss:$16 sps:$4 sm:$0xff]   ;;  %p2087_p13 = por %p2086_p12, %p2085_p11 }
  0x4e   : > { %1044 = vmatpush2.bf16.msra.mxu0 %v1918_v42  ;;  %v2010_v42 = vld [vmem:[#allocation2 + $0x1c8] ss:$16 sps:$4 sm:$0xff]   ;;  %p2088_p0 = pnand %p2087_p13, %p2081_p10 }
  0x4f   : > { %1087 = vmatpush2.bf16.msra.mxu1 %v1919_v43  ;;  %1045 = vmatprep.subr.bf16.mxu0 %v1920_v44  ;;  %v2013_v43 = vld [vmem:[#allocation2 + $0x3c8] ss:$16 sps:$4 sm:$0xff]   ;;  %v2018_v44 = vld [vmem:[#allocation2 + $0x1ac] ss:$16 sps:$4 sm:$0xff]  }
  0x50   : > { %1088 = vmatprep.subr.bf16.mxu1 %v1922_v45  ;;  %v2021_v45 = vld [vmem:[#allocation2 + $0x3ac] ss:$16 sps:$4 sm:$0xff]  }
  0x52   : > { %1046 = vmatpush2.bf16.msra.mxu0 %v1924_v46  ;;  %v2016_v46 = vld [vmem:[#allocation2 + $0x1a8] ss:$16 sps:$4 sm:$0xff]  }
  0x53   : > { %1089 = vmatpush2.bf16.msra.mxu1 %v1925_v47  ;;  %1047 = vmatprep.subr.bf16.mxu0 %v1926_v48  ;;  %v2019_v47 = vld [vmem:[#allocation2 + $0x3a8] ss:$16 sps:$4 sm:$0xff]   ;;  %v2024_v48 = vld [vmem:[#allocation2 + $0x18c] ss:$16 sps:$4 sm:$0xff]  }
  0x54   : > { %1090 = vmatprep.subr.bf16.mxu1 %v1928_v50  ;;  %v2022_v50 = vld [vmem:[#allocation2 + $0x188] ss:$16 sps:$4 sm:$0xff]  }
  0x56   : > { %1048 = vmatpush2.bf16.msra.mxu0 %v1930_v52  ;;  %v2030_v52 = vld [vmem:[#allocation2 + $0x16c] ss:$16 sps:$4 sm:$0xff]  }
  0x57   : > { %1091 = vmatpush2.bf16.msra.mxu1 %v1931_v53  ;;  %1049 = vmatprep.subr.bf16.mxu0 %v1932_v54  ;;  %v2033_v53 = vld [vmem:[#allocation2 + $0x36c] ss:$16 sps:$4 sm:$0xff]   ;;  %v2028_v54 = vld [vmem:[#allocation2 + $0x168] ss:$16 sps:$4 sm:$0xff]  }
  0x58   : > { %1092 = vmatprep.subr.bf16.mxu1 %v1934_v55  ;;  %v2031_v55 = vld [vmem:[#allocation2 + $0x368] ss:$16 sps:$4 sm:$0xff]  }
  0x5a   : > { %1050 = vmatpush2.bf16.msra.mxu0 %v1936_v56  ;;  %v2036_v56 = vld [vmem:[#allocation2 + $0x14c] ss:$16 sps:$4 sm:$0xff]  }
  0x5b   : > { %1093 = vmatpush2.bf16.msra.mxu1 %v1937_v57  ;;  %1051 = vmatprep.subr.bf16.mxu0 %v1938_v58  ;;  %v2039_v57 = vld [vmem:[#allocation2 + $0x34c] ss:$16 sps:$4 sm:$0xff]   ;;  %v2034_v58 = vld [vmem:[#allocation2 + $0x148] ss:$16 sps:$4 sm:$0xff]  }
  0x5c   : > { %1094 = vmatprep.subr.bf16.mxu1 %v1940_v59  ;;  %v2037_v59 = vld [vmem:[#allocation2 + $0x348] ss:$16 sps:$4 sm:$0xff]  }
  0x5e   : > { %1052 = vmatpush2.bf16.msra.mxu0 %v1942_v60  ;;  %v2042_v60 = vld [vmem:[#allocation2 + $0x12c] ss:$16 sps:$4 sm:$0xff]  }
  0x5f   : > { %1095 = vmatpush2.bf16.msra.mxu1 %v1943_v61  ;;  %1053 = vmatprep.subr.bf16.mxu0 %v1944_v62  ;;  %v2045_v61 = vld [vmem:[#allocation2 + $0x32c] ss:$16 sps:$4 sm:$0xff]   ;;  %v2040_v62 = vld [vmem:[#allocation2 + $0x128] ss:$16 sps:$4 sm:$0xff]  }
  0x60   : > { %1096 = vmatprep.subr.bf16.mxu1 %v1946_v63  ;;  %v2043_v63 = vld [vmem:[#allocation2 + $0x328] ss:$16 sps:$4 sm:$0xff]  }
  0x62   : > { %1054 = vmatpush2.bf16.msra.mxu0 %v1948_v0  ;;  %v2048_v0 = vld [vmem:[#allocation2 + $0x10c] ss:$16 sps:$4 sm:$0xff]  }
  0x63   : > { %1097 = vmatpush2.bf16.msra.mxu1 %v1949_v1  ;;  %1109 = vmatprep.subr.bf16.mxu0 %v1958_v2  ;;  %v2051_v1 = vld [vmem:[#allocation2 + $0x30c] ss:$16 sps:$4 sm:$0xff]   ;;  %v2046_v2 = vld [vmem:[#allocation2 + $0x108] ss:$16 sps:$4 sm:$0xff]  }
  0x64   : > { %1152 = vmatprep.subr.bf16.mxu1 %v1961_v3  ;;  %v2049_v3 = vld [vmem:[#allocation2 + $0x308] ss:$16 sps:$4 sm:$0xff]  }
  0x65   : > { %1056 = vmatmul.mubr.bf16.vlgmr.msra.gmra.mxu0 %v2253_v4 }
  0x66   : > { %1099 = vmatmul.mubr.bf16.vlgmr.msra.gmra.mxu1 %v2256_v5  ;;  %1110 = vmatpush1.bf16.msra.mxu0 %v1956_v6  ;;  %v1226_v6 = vld [vmem:[%s2520_s2 + $0xf8] sm:$0xff] }
  0x67   : > { %1153 = vmatpush1.bf16.msra.mxu1 %v1959_v7  ;;  %1111 = vmatprep.subr.bf16.mxu0 %v1964_v8  ;;  %v1210_v7 = vld [vmem:[%s2520_s2 + $0x78] sm:$0xff]  ;;  %v1225_v8 = vld [vmem:[%s2520_s2 + $0xf0] sm:$0xff] }
  0x68   : > { %1154 = vmatprep.subr.bf16.mxu1 %v1967_v9  ;;  %1141 = vmatprep.mubr.bf16.mxu0 %v1952_v49  ;;  %v2027_v49 = vld [vmem:[#allocation2 + $0x38c] ss:$16 sps:$4 sm:$0xff]   ;;  %v1209_v9 = vld [vmem:[%s2520_s2 + $0x70] sm:$0xff] }
  0x69   : > { %1184 = vmatprep.mubr.bf16.mxu1 %v1955_v51  ;;  %v2025_v51 = vld [vmem:[#allocation2 + $0x388] ss:$16 sps:$4 sm:$0xff]  }
  0x6a   : > { %1112 = vmatpush1.bf16.msra.mxu0 %v1962_v10  ;;  %v1224_v10 = vld [vmem:[%s2520_s2 + $0xe8] sm:$0xff] }
  0x6b   : > { %1155 = vmatpush1.bf16.msra.mxu1 %v1965_v11  ;;  %1113 = vmatprep.subr.bf16.mxu0 %v1970_v12  ;;  %v1208_v11 = vld [vmem:[%s2520_s2 + $0x68] sm:$0xff]  ;;  %v1222_v12 = vld [vmem:[%s2520_s2 + $0xd8] sm:$0xff] }
  0x6c   : > { %1156 = vmatprep.subr.bf16.mxu1 %v1973_v13  ;;  %v1206_v13 = vld [vmem:[%s2520_s2 + $0x58] sm:$0xff] }
  0x6e   : > { %1114 = vmatpush1.bf16.msra.mxu0 %v1968_v14  ;;  %v1221_v14 = vld [vmem:[%s2520_s2 + $0xd0] sm:$0xff] }
  0x6f   : > { %1157 = vmatpush1.bf16.msra.mxu1 %v1971_v15  ;;  %1115 = vmatprep.subr.bf16.mxu0 %v1976_v16  ;;  %v1205_v15 = vld [vmem:[%s2520_s2 + $0x50] sm:$0xff]  ;;  %v1220_v16 = vld [vmem:[%s2520_s2 + $0xc8] sm:$0xff] }
  0x70   : > { %1158 = vmatprep.subr.bf16.mxu1 %v1979_v17  ;;  %v1204_v17 = vld [vmem:[%s2520_s2 + $0x48] sm:$0xff] }
  0x72   : > { %1116 = vmatpush1.bf16.msra.mxu0 %v1974_v18  ;;  %v1219_v18 = vld [vmem:[%s2520_s2 + $0xc0] sm:$0xff] }
  0x73   : > { %1159 = vmatpush1.bf16.msra.mxu1 %v1977_v19  ;;  %1117 = vmatprep.subr.bf16.mxu0 %v1982_v20  ;;  %v1258_v19 = vld [vmem:[%s2520_s2 + $0x1f8] sm:$0xff] }
  0x74   : > { %1160 = vmatprep.subr.bf16.mxu1 %v1985_v21  ;;  %v1242_v20 = vld [vmem:[%s2520_s2 + $0x178] sm:$0xff]  ;;  %v1257_v21 = vld [vmem:[%s2520_s2 + $0x1f0] sm:$0xff] }
  0x76   : > { %1118 = vmatpush1.bf16.msra.mxu0 %v1980_v22  ;;  %v1203_v22 = vld [vmem:[%s2520_s2 + $0x40] sm:$0xff] }
  0x77   : > { %1161 = vmatpush1.bf16.msra.mxu1 %v1983_v23  ;;  %1119 = vmatprep.subr.bf16.mxu0 %v1988_v24  ;;  %v1241_v23 = vld [vmem:[%s2520_s2 + $0x170] sm:$0xff]  ;;  %v1218_v24 = vld [vmem:[%s2520_s2 + $0xb8] sm:$0xff] }
  0x78   : > { %1162 = vmatprep.subr.bf16.mxu1 %v1991_v25  ;;  %v1256_v25 = vld [vmem:[%s2520_s2 + $0x1e8] sm:$0xff] }
  0x7a   : > { %1120 = vmatpush1.bf16.msra.mxu0 %v1986_v26  ;;  %v1202_v26 = vld [vmem:[%s2520_s2 + $0x38] sm:$0xff] }
  0x7b   : > { %1163 = vmatpush1.bf16.msra.mxu1 %v1989_v27  ;;  %1121 = vmatprep.subr.bf16.mxu0 %v1994_v28  ;;  %v1240_v27 = vld [vmem:[%s2520_s2 + $0x168] sm:$0xff]  ;;  %v1217_v28 = vld [vmem:[%s2520_s2 + $0xb0] sm:$0xff] }
  0x7c   : > { %1164 = vmatprep.subr.bf16.mxu1 %v1997_v29  ;;  %v1255_v29 = vld [vmem:[%s2520_s2 + $0x1e0] sm:$0xff] }
  0x7e   : > { %1122 = vmatpush1.bf16.msra.mxu0 %v1992_v30  ;;  %v1201_v30 = vld [vmem:[%s2520_s2 + $0x30] sm:$0xff] }
  0x7f   : > { %1165 = vmatpush1.bf16.msra.mxu1 %v1995_v31  ;;  %1123 = vmatprep.subr.bf16.mxu0 %v2000_v32  ;;  %v1239_v31 = vld [vmem:[%s2520_s2 + $0x160] sm:$0xff]  ;;  %v1216_v32 = vld [vmem:[%s2520_s2 + $0xa8] sm:$0xff] }
  0x80   : > { %1166 = vmatprep.subr.bf16.mxu1 %v2003_v33  ;;  %v1254_v33 = vld [vmem:[%s2520_s2 + $0x1d8] sm:$0xff] }
  0x82   : > { %1124 = vmatpush1.bf16.msra.mxu0 %v1998_v34  ;;  %v1200_v34 = vld [vmem:[%s2520_s2 + $0x28] sm:$0xff] }
  0x83   : > { %1167 = vmatpush1.bf16.msra.mxu1 %v2001_v35  ;;  %1125 = vmatprep.subr.bf16.mxu0 %v2006_v36  ;;  %v1238_v35 = vld [vmem:[%s2520_s2 + $0x158] sm:$0xff]  ;;  %v1215_v36 = vld [vmem:[%s2520_s2 + $0xa0] sm:$0xff] }
  0x84   : > { %1168 = vmatprep.subr.bf16.mxu1 %v2009_v37  ;;  %v1253_v37 = vld [vmem:[%s2520_s2 + $0x1d0] sm:$0xff] }
  0x86   : > { %1126 = vmatpush2.bf16.msra.mxu0 %v2004_v38  ;;  %v1199_v38 = vld [vmem:[%s2520_s2 + $0x20] sm:$0xff] }
  0x87   : > { %1169 = vmatpush2.bf16.msra.mxu1 %v2007_v39  ;;  %1127 = vmatprep.subr.bf16.mxu0 %v2012_v40  ;;  %v1237_v39 = vld [vmem:[%s2520_s2 + $0x150] sm:$0xff]  ;;  %v1214_v40 = vld [vmem:[%s2520_s2 + $0x98] sm:$0xff] }
  0x88   : > { %1170 = vmatprep.subr.bf16.mxu1 %v2015_v41  ;;  %v1252_v41 = vld [vmem:[%s2520_s2 + $0x1c8] sm:$0xff] }
  0x8a   : > { %1128 = vmatpush2.bf16.msra.mxu0 %v2010_v42  ;;  %v1198_v42 = vld [vmem:[%s2520_s2 + $0x18] sm:$0xff] }
  0x8b   : > { %1171 = vmatpush2.bf16.msra.mxu1 %v2013_v43  ;;  %1129 = vmatprep.subr.bf16.mxu0 %v2018_v44  ;;  %v1236_v43 = vld [vmem:[%s2520_s2 + $0x148] sm:$0xff]  ;;  %v1213_v44 = vld [vmem:[%s2520_s2 + $0x90] sm:$0xff] }
  0x8c   : > { %1172 = vmatprep.subr.bf16.mxu1 %v2021_v45  ;;  %v1251_v45 = vld [vmem:[%s2520_s2 + $0x1c0] sm:$0xff] }
  0x8e   : > { %1130 = vmatpush2.bf16.msra.mxu0 %v2016_v46  ;;  %v1197_v46 = vld [vmem:[%s2520_s2 + $0x10] sm:$0xff] }
  0x8f   : > { %1173 = vmatpush2.bf16.msra.mxu1 %v2019_v47  ;;  %1131 = vmatprep.subr.bf16.mxu0 %v2024_v48  ;;  %v1235_v47 = vld [vmem:[%s2520_s2 + $0x140] sm:$0xff]  ;;  %v1212_v48 = vld [vmem:[%s2520_s2 + $0x88] sm:$0xff] }
  0x90   : > { %1174 = vmatprep.subr.bf16.mxu1 %v2027_v49  ;;  %v1250_v49 = vld [vmem:[%s2520_s2 + $0x1b8] sm:$0xff] }
  0x92   : > { %1132 = vmatpush2.bf16.msra.mxu0 %v2022_v50  ;;  %v1196_v50 = vld [vmem:[%s2520_s2 + $0x8] sm:$0xff] }
  0x93   : > { %1175 = vmatpush2.bf16.msra.mxu1 %v2025_v51  ;;  %1133 = vmatprep.subr.bf16.mxu0 %v2030_v52  ;;  %v1234_v51 = vld [vmem:[%s2520_s2 + $0x138] sm:$0xff]  ;;  %v1211_v52 = vld [vmem:[%s2520_s2 + $0x80] sm:$0xff] }
  0x94   : > { %1176 = vmatprep.subr.bf16.mxu1 %v2033_v53  ;;  %v1249_v53 = vld [vmem:[%s2520_s2 + $0x1b0] sm:$0xff] }
  0x96   : > { %1134 = vmatpush2.bf16.msra.mxu0 %v2028_v54  ;;  %v1195_v54 = vld [vmem:[%s2520_s2] sm:$0xff] }
  0x97   : > { %1177 = vmatpush2.bf16.msra.mxu1 %v2031_v55  ;;  %1135 = vmatprep.subr.bf16.mxu0 %v2036_v56  ;;  %v1233_v55 = vld [vmem:[%s2520_s2 + $0x130] sm:$0xff]  ;;  %v1248_v56 = vld [vmem:[%s2520_s2 + $0x1a8] sm:$0xff] }
  0x98   : > { %1178 = vmatprep.subr.bf16.mxu1 %v2039_v57  ;;  %v1232_v57 = vld [vmem:[%s2520_s2 + $0x128] sm:$0xff] }
  0x9a   : > { %1136 = vmatpush2.bf16.msra.mxu0 %v2034_v58  ;;  %v1247_v58 = vld [vmem:[%s2520_s2 + $0x1a0] sm:$0xff] }
  0x9b   : > { %1179 = vmatpush2.bf16.msra.mxu1 %v2037_v59  ;;  %1137 = vmatprep.subr.bf16.mxu0 %v2042_v60  ;;  %v1231_v59 = vld [vmem:[%s2520_s2 + $0x120] sm:$0xff]  ;;  %v1246_v60 = vld [vmem:[%s2520_s2 + $0x198] sm:$0xff] }
  0x9c   : > { %1180 = vmatprep.subr.bf16.mxu1 %v2045_v61  ;;  %v1230_v61 = vld [vmem:[%s2520_s2 + $0x118] sm:$0xff] }
  0x9e   : > { %1138 = vmatpush2.bf16.msra.mxu0 %v2040_v62  ;;  %v1245_v62 = vld [vmem:[%s2520_s2 + $0x190] sm:$0xff] }
  0x9f   : > { %1181 = vmatpush2.bf16.msra.mxu1 %v2043_v63  ;;  %1139 = vmatprep.subr.bf16.mxu0 %v2048_v0  ;;  %v1229_v63 = vld [vmem:[%s2520_s2 + $0x110] sm:$0xff]  ;;  %v1244_v0 = vld [vmem:[%s2520_s2 + $0x188] sm:$0xff] }
  0xa0   : > { %1182 = vmatprep.subr.bf16.mxu1 %v2051_v1  ;;  %v1228_v1 = vld [vmem:[%s2520_s2 + $0x108] sm:$0xff] }
  0xa2   : > { %1140 = vmatpush2.bf16.msra.mxu0 %v2046_v2  ;;  %v1243_v2 = vld [vmem:[%s2520_s2 + $0x180] sm:$0xff] }
  0xa3   : > { %1183 = vmatpush2.bf16.msra.mxu1 %v2049_v3  ;;  %1724 = vmatprep.subr.mxu0 %v1226_v6  ;;  %v1227_v3 = vld [vmem:[%s2520_s2 + $0x100] sm:$0xff] }
  0xa4   : > { %1762 = vmatprep.subr.mxu1 %v1258_v19 }
  0xa5   : > { %1142 = vmatmul.mubr.bf16.vlgmr.msra.gmra.mxu0 %v2253_v4  ;;  %v1223_v4 = vld [vmem:[%s2520_s2 + $0xe0] sm:$0xff] }
  0xa6   : > { %1185 = vmatmul.mubr.bf16.vlgmr.msra.gmra.mxu1 %v2256_v5  ;;  %1725 = vmatpush3.msra.mxu0 %v1210_v7  ;;  %v1207_v5 = vld [vmem:[%s2520_s2 + $0x60] sm:$0xff] }
  0xa7   : > { %1726 = vmatprep.subr.mxu0 %v1225_v8  ;;  %1763 = vmatpush3.msra.mxu1 %v1242_v20 }
  0xa8   : > { %1727 = vmatpush3.msra.mxu0 %v1209_v9  ;;  %1764 = vmatprep.subr.mxu1 %v1257_v21 }
  0xa9   : > { %1728 = vmatprep.subr.mxu0 %v1224_v10  ;;  %1765 = vmatpush3.msra.mxu1 %v1241_v23 }
  0xaa   : > { %1729 = vmatpush3.msra.mxu0 %v1208_v11  ;;  %1766 = vmatprep.subr.mxu1 %v1256_v25 }
  0xab   : > { %1730 = vmatprep.subr.mxu0 %v1223_v4  ;;  %1767 = vmatpush3.msra.mxu1 %v1240_v27 }
  0xac   : > { %1731 = vmatpush3.msra.mxu0 %v1207_v5  ;;  %1768 = vmatprep.subr.mxu1 %v1255_v29 }
  0xad   : > { %1732 = vmatprep.subr.mxu0 %v1222_v12  ;;  %1769 = vmatpush3.msra.mxu1 %v1239_v31 }
  0xae   : > { %1733 = vmatpush3.msra.mxu0 %v1206_v13  ;;  %1770 = vmatprep.subr.mxu1 %v1254_v33 }
  0xaf   : > { %1734 = vmatprep.subr.mxu0 %v1221_v14  ;;  %1771 = vmatpush3.msra.mxu1 %v1238_v35 }
  0xb0   : > { %1735 = vmatpush3.msra.mxu0 %v1205_v15  ;;  %1772 = vmatprep.subr.mxu1 %v1253_v37 }
  0xb1   : > { %1736 = vmatprep.subr.mxu0 %v1220_v16  ;;  %1773 = vmatpush3.msra.mxu1 %v1237_v39 }
  0xb2   : > { %1737 = vmatpush3.msra.mxu0 %v1204_v17  ;;  %1774 = vmatprep.subr.mxu1 %v1252_v41 }
  0xb3   : > { %1738 = vmatprep.subr.mxu0 %v1219_v18  ;;  %1775 = vmatpush3.msra.mxu1 %v1236_v43 }
  0xb4   : > { %1739 = vmatpush3.msra.mxu0 %v1203_v22  ;;  %1776 = vmatprep.subr.mxu1 %v1251_v45 }
  0xb5   : > { %1740 = vmatprep.subr.mxu0 %v1218_v24  ;;  %1777 = vmatpush3.msra.mxu1 %v1235_v47 }
  0xb6   : > { %1741 = vmatpush3.msra.mxu0 %v1202_v26  ;;  %1778 = vmatprep.subr.mxu1 %v1250_v49 }
  0xb7   : > { %1742 = vmatprep.subr.mxu0 %v1217_v28  ;;  %1779 = vmatpush3.msra.mxu1 %v1234_v51 }
  0xb8   : > { %1743 = vmatpush3.msra.mxu0 %v1201_v30  ;;  %1780 = vmatprep.subr.mxu1 %v1249_v53 }
  0xb9   : > { %1744 = vmatprep.subr.mxu0 %v1216_v32  ;;  %1781 = vmatpush3.msra.mxu1 %v1233_v55 }
  0xba   : > { %1745 = vmatpush3.msra.mxu0 %v1200_v34  ;;  %1782 = vmatprep.subr.mxu1 %v1248_v56 }
  0xbb   : > { %1746 = vmatprep.subr.mxu0 %v1215_v36  ;;  %1783 = vmatpush3.msra.mxu1 %v1232_v57 }
  0xbc   : > { %1747 = vmatpush3.msra.mxu0 %v1199_v38  ;;  %1784 = vmatprep.subr.mxu1 %v1247_v58 }
  0xbd   : > { %1748 = vmatprep.subr.mxu0 %v1214_v40  ;;  %1785 = vmatpush3.msra.mxu1 %v1231_v59 }
  0xbe   : > { %1749 = vmatpush3.msra.mxu0 %v1198_v42  ;;  %1786 = vmatprep.subr.mxu1 %v1246_v60 }
  0xbf   : > { %1750 = vmatprep.subr.mxu0 %v1213_v44  ;;  %1787 = vmatpush3.msra.mxu1 %v1230_v61 }
  0xc0   : > { %1751 = vmatpush3.msra.mxu0 %v1197_v46  ;;  %1788 = vmatprep.subr.mxu1 %v1245_v62 }
  0xc1   : > { %1752 = vmatprep.subr.mxu0 %v1212_v48  ;;  %1789 = vmatpush3.msra.mxu1 %v1229_v63 }
  0xc2   : > { %1753 = vmatpush3.msra.mxu0 %v1196_v50  ;;  %1790 = vmatprep.subr.mxu1 %v1244_v0 }
  0xc3   : > { %1754 = vmatprep.subr.mxu0 %v1211_v52  ;;  %1791 = vmatpush3.msra.mxu1 %v1228_v1 }
  0xc4   : > { %1755 = vmatpush3.msra.mxu0 %v1195_v54  ;;  %1792 = vmatprep.subr.mxu1 %v1243_v2 }
  0xc5   : > { %1793 = vmatpush3.msra.mxu1 %v1227_v3 }
 0x125   : > { %v1057_v6 = vpop.f32.mrf.mxu0 }
 0x126   : > { %v1100_v7 = vpop.f32.mrf.mxu1 }
 0x127   : > { %v1101_v8 = vadd.f32 %v1100_v7, %v1057_v6  ;;  %v1059_v9 = vpop.f32.mrf.mxu0 }
 0x128   : > { %v1102_v10 = vpop.f32.mrf.mxu1 }
 0x129   : > { %v1103_v11 = vadd.f32 %v1102_v10, %v1059_v9  ;;  %v1061_v4 = vpop.f32.mrf.mxu0 }
 0x12a   : > { %v1104_v5 = vpop.f32.mrf.mxu1 }
 0x12b   : > { %v1718_v12 = vpack.c.bf16 %v1103_v11, %v1101_v8  ;;  %1323 = vmatprep.mubr.f32.mxu0 %v1103_v11  ;;  %v1063_v13 = vpop.f32.mrf.mxu0  ;;  %v1105_v15 = vadd.f32 %v1104_v5, %v1061_v4 }
 0x12c   : > { %v1106_v14 = vpop.f32.mrf.mxu1  ;;  %1324 = vmatmul.mubr.f32.vlgmr.msra.gmra.mxu0 %v1101_v8 }
 0x12d   : > { %1436 = vst [vmem:[%s2457_s22] sm:$0xff] %v1718_v12  ;;  %v1107_v16 = vadd.f32 %v1106_v14, %v1063_v13 }
 0x12f   : > { %v1720_v17 = vpack.c.bf16 %v1107_v16, %v1105_v15  ;;  %1328 = vmatprep.mubr.f32.mxu0 %v1107_v16 }
 0x130   : > { %1329 = vmatmul.mubr.f32.gmra.mxu0 %v1105_v15 }
 0x131   : > { %1438 = vst [vmem:[%s2457_s22 + $0x10] sm:$0xff] %v1720_v17 }
 0x165   : > { %v1143_v18 = vpop.f32.mrf.mxu0 }
 0x166   : > { %v1186_v19 = vpop.f32.mrf.mxu1 }
 0x167   : > { %v1145_v20 = vpop.f32.mrf.mxu0  ;;  %v1187_v22 = vadd.f32 %v1186_v19, %v1143_v18 }
 0x168   : > { %v1188_v21 = vpop.f32.mrf.mxu1 }
 0x169   : > { %v1189_v23 = vadd.f32 %v1188_v21, %v1145_v20  ;;  %v1147_v24 = vpop.f32.mrf.mxu0 }
 0x16a   : > { %v1190_v25 = vpop.f32.mrf.mxu1 }
 0x16b   : > { %v1719_v26 = vpack.c.bf16 %v1189_v23, %v1187_v22  ;;  %1398 = vmatprep.mubr.f32.mxu1 %v1189_v23  ;;  %v1149_v27 = vpop.f32.mrf.mxu0  ;;  %v1191_v29 = vadd.f32 %v1190_v25, %v1147_v24 }
 0x16c   : > { %v1192_v28 = vpop.f32.mrf.mxu1  ;;  %1399 = vmatmul.mubr.f32.vlgmr.msra.gmra.mxu1 %v1187_v22 }
 0x16d   : > { %1437 = vst [vmem:[%s2457_s22 + $0x8] sm:$0xff] %v1719_v26  ;;  %v1193_v30 = vadd.f32 %v1192_v28, %v1149_v27 }
 0x16f   : > { %v1721_v31 = vpack.c.bf16 %v1193_v30, %v1191_v29  ;;  %1403 = vmatprep.mubr.f32.mxu1 %v1193_v30 }
 0x170   : > { %1404 = vmatmul.mubr.f32.gmra.mxu1 %v1191_v29 }
 0x171   : > { %1439 = vst [vmem:[%s2457_s22 + $0x18] sm:$0xff] %v1721_v31 }
 0x172   : > { %2091 = shalt.err (!%p2088_p0)
}
 0x173   : > { %s2092_s19 = scalar_lea.hbm %s2470_s30, 512  ;;  %s2096_s13 = scalar_lea.hbm %s2521_s3, 1024 }
 0x174   : > { %p2093_p1 = scmp.ne.s32.totalorder %s2470_s30, %s2092_s19  ;;  %p2097_p4 = scmp.lt.s32.totalorder %s2470_s30, %s2521_s3 }
 0x175   : > { %p2098_p7 = scmp.lt.s32.totalorder %s2096_s13, %s2092_s19 }
 0x176   : > { %p2094_p2 = pnand %p2093_p1, %p2213_p5 }
 0x177   : > { %p2099_p6 = por %p2098_p7, %p2097_p4 }
 0x178   : > { %p2095_p3 = pneg %p2094_p2 }
 0x17a   : > { %p2100_p8 = pnand %p2099_p6, %p2095_p3 }
 0x17c   : > { %2103 = shalt.err (!%p2100_p8)
}
 0x17d   : > { %s2148_s22 = smov 256   ;;  %s2149_s27 = smov 16   ;;  %vm1409_vm0 = vcmask 31744  }
 0x17e   : > { %1804 = dma.vmem_to_hbm [thread:$0]  (%p2213_p5), %s2464_s23, 512, %s2470_s30, %s2474_s5, %s2148_s22, %s2148_s22, %s2149_s27  }
 0x17f   : > { %s1574_s28 = sshll.u32 %s2532_s9, 3 }
 0x180   : > { %s229_s7 = scalar_lea.vmem %s2522_s4, %s1574_s28 }
 0x1ec   : > { %v1756_v32 = vpop.f32.mrf.mxu0 }
 0x1ee   : > { %v1757_v33 = vpop.f32.mrf.mxu0 }
 0x1ef   : > { %v1758_v37 = vadd.f32 %v1757_v33, %v1756_v32 }
 0x1f0   : > { %v1759_v34 = vpop.f32.mrf.mxu0 }
 0x1f2   : > { %v1760_v39 = vpop.f32.mrf.mxu0 }
 0x1f3   : > { %v1761_v43 = vadd.f32 %v1760_v39, %v1759_v34 }
 0x22c   : > { %v1794_v35 = vpop.f32.mrf.mxu1 }
 0x22e   : > { %v1795_v36 = vpop.f32.mrf.mxu1 }
 0x22f   : > { %v1796_v38 = vadd.f32 %v1795_v36, %v1794_v35 }
 0x230   : > { %v1797_v40 = vpop.f32.mrf.mxu1 }
 0x231   : > { %v1401_v41 = vadd.f32 %v1796_v38, %v1758_v37 }
 0x232   : > { %v1798_v42 = vpop.f32.mrf.mxu1 }
 0x233   : > { %1410 = vst.msk [vmem:[%s229_s7] sm:$0xff] %vm1409_vm0, %v1401_v41  ;;  %v1799_v44 = vadd.f32 %v1798_v42, %v1797_v40 }
 0x235   : > { %v1406_v45 = vadd.f32 %v1799_v44, %v1761_v43 }
 0x237   : > { %1411 = vst.msk [vmem:[%s229_s7 + $0x8] sm:$0xff] %vm1409_vm0, %v1406_v45 }
 0x238 PF: > { %p1816_p5 = scmp.ge.s32.totalorder %s2142_s18, 2  ;;  %s1479_s25 = sand.u32 1, %s2130_s15  }
 0x239   : > { %p2526_p9 = scmp.ne.s32.totalorder %s2524_s26, 0  ;;  %s1480_s9 = scalar_lea.sflag [#allocation4], %s1479_s25 }
 0x23b   : > { %p1811_p10 = pnand %p1816_p5, %p2526_p9 }
 0x23d   : > { %p1812_p11 = pneg %p1811_p10 }
 0x23f   : > { %2125 = dma.done.wait (%p1812_p11), %s1480_s9, 512  }
 0x240   : > { %2127 = vsyncadd (%p1812_p11), %s1480_s9, 4294966784  ;;  %p16_p12 = scmp.ge.s32.totalorder %s2200_s21, 4   ;;  %s2527_s15 = smov %s2134_s16 }
 0x241   : > { %s2528_s16 = smov %s2138_s17  ;;  %s2529_s17 = smov %s2211_s24 }
 0x242   : > { %s2530_s18 = smov %s2200_s21  ;;  %18 = sbr.rel (!%p16_p12) target bundleno = 4 (0x4), region = 84 }
 0x247   :  { %1493 = vsyncpa [#allocation3], 1 }
 0x248   :  { %1495 = vsyncpa [#allocation3 + $0x1], 1 }
 0x249   :  { %1496 = vsyncpa [#allocation4], 1 }
 0x24a   :  { %1498 = vsyncpa [#allocation4 + $0x1], 1 }

</bundles_post_ra>
